<compile_context>
chip_gen: v7x
topology: tpu7x:2x2x1
jax: 0.10.0
libtpu: 0.0.40
codegen_flags: <defaults>
</compile_context>

<pallas_src>
import functools

import jax
import jax.numpy as jnp
from jax import lax
from jax.experimental import pallas as pl
from jax.experimental.pallas import tpu as pltpu

NEGPOS_RATIO = 3  # cfg.LOSS.NEGPOS_RATIO


def _detect_loss_kernel(conf_ref, loc_ref, loct_ref, conft_ref, w_ref,
                        ll_ref, lcc_ref, n_ref,
                        lc_ref, count_ref, *, real_p, tile):
    """One batch row per grid step.  conf_ref: (1, C, Pp); loc*: (1, 4, Pp);
    conft_ref: (1, 1, Pp) int32 (-1 marks padded priors); w_ref: (C,) in SMEM."""
    conf = conf_ref[0]                       # (C, Pp) f32, priors lane-dense
    conf_t = conft_ref[0]                    # (1, Pp) i32
    C, Pp = conf.shape
    T = tile

    pos = conf_t > 0                         # (1, Pp)
    valid = conf_t >= 0                      # padded priors carry -1
    pos_f = pos.astype(jnp.float32)

    # ---------------- localization: smooth-L1 over positive priors ----------------
    d = loc_ref[0] - loct_ref[0]             # (4, Pp)
    ad = jnp.abs(d)
    sl1 = jnp.where(ad < 1.0, 0.5 * d * d, ad - 0.5)
    loss_l = jnp.sum(jnp.sum(sl1, axis=0, keepdims=True) * pos_f)

    # ---------------- softmax pieces (classes on sublanes, priors on lanes) -------
    m = jnp.max(conf, axis=0, keepdims=True)                              # (1, Pp)
    lse = jnp.log(jnp.sum(jnp.exp(conf - m), axis=0, keepdims=True)) + m  # (1, Pp)
    bg_prob = jnp.exp(conf[0:1, :] - lse)                                 # (1, Pp)

    # target logit / per-class CE weight via a short unrolled loop over C classes
    logit_t = jnp.zeros_like(lse)
    w_t = jnp.zeros_like(lse)
    for c in range(C):
        sel = conf_t == c
        logit_t = jnp.where(sel, conf[c:c + 1, :], logit_t)
        w_t = jnp.where(sel, w_ref[c], w_t)                               # SMEM scalar
    wnll = w_t * (lse - logit_t)             # per-prior weighted CE term
    wnll_neg = wnll * (1.0 - pos_f)          # contribution if picked as hard negative

    # ---------------- hard-negative mining -----------------------------------------
    # score: -p(background); positives forced to -2; padded priors to -3 so they
    # rank last and never enter the count of any real prior.
    lc_ref[...] = jnp.where(pos, -2.0, jnp.where(valid, -bg_prob, -3.0))

    num_pos = jnp.sum(pos_f)
    num_neg = jnp.clip(NEGPOS_RATIO * num_pos, 3.0, float(real_p - 1))

    # neg_j  <=>  #{i : lc_i >= lc_j} <= num_neg   (sort-free, matches torch's
    # descending sort + strict-'>' threshold).  Tiled into (T, T) bf16 slabs,
    # column counts reduced on the MXU via a ones-row matmul.
    count_ref[...] = jnp.zeros_like(count_ref)
    eye = (lax.broadcasted_iota(jnp.int32, (T, T), 0) ==
           lax.broadcasted_iota(jnp.int32, (T, T), 1))                    # (T, T)
    ones_row = jnp.ones((1, T), jnp.bfloat16)
    n_tiles = Pp // T

    def key_body(kt, carry):
        k0 = pl.multiple_of(kt * T, T)
        keys = lc_ref[:, pl.ds(k0, T)]                                    # (1, T)
        # lane -> sublane move of the key scores (exact masked-sum "transpose")
        keys_col = jnp.sum(jnp.where(eye, keys, 0.0), axis=1, keepdims=True)  # (T, 1)

        def q_body(qt, carry2):
            q0 = pl.multiple_of(qt * T, T)
            ge = (keys_col >= lc_ref[:, pl.ds(q0, T)]).astype(jnp.bfloat16)   # (T, T)
            cnt = jnp.dot(ones_row, ge, preferred_element_type=jnp.float32)   # (1, T)
            count_ref[:, pl.ds(q0, T)] += cnt
            return carry2

        return lax.fori_loop(0, n_tiles, q_body, carry)

    lax.fori_loop(0, n_tiles, key_body, 0)

    neg = count_ref[...] <= num_neg                                       # (1, Pp)

    # ---------------- weighted CE over {positives U hard negatives} ----------------
    loss_c = jnp.sum(pos_f * wnll) + jnp.sum(jnp.where(neg, wnll_neg, 0.0))

    ll_ref[...] = jnp.full((1, 1, 1), loss_l, dtype=jnp.float32)
    lcc_ref[...] = jnp.full((1, 1, 1), loss_c, dtype=jnp.float32)
    n_ref[...] = jnp.full((1, 1, 1), num_pos, dtype=jnp.float32)


def _pad_last(x, target, value):
    pad = target - x.shape[-1]
    if pad == 0:
        return x
    widths = [(0, 0)] * (x.ndim - 1) + [(0, pad)]
    return jnp.pad(x, widths, constant_values=value)


@jax.jit
def detect_loss(loc_data, conf_data, loc_t, conf_t, conf_weights):
    """SSD multibox loss forward: returns (loss_l, loss_c, N)."""
    B, P, C = conf_data.shape
    T = 512 if P > 512 else 128               # ranking tile; <=512 fits v7x VMEM budget
    Pp = pl.cdiv(P, T) * T                    # priors padded to a tile multiple

    # Layout plumbing only (no compute moved out of the kernel): priors -> lane axis.
    conf_T = _pad_last(jnp.transpose(conf_data.astype(jnp.float32), (0, 2, 1)), Pp, 0.0)
    loc_T = _pad_last(jnp.transpose(loc_data.astype(jnp.float32), (0, 2, 1)), Pp, 0.0)
    loct_T = _pad_last(jnp.transpose(loc_t.astype(jnp.float32), (0, 2, 1)), Pp, 0.0)
    conft3 = _pad_last(conf_t.astype(jnp.int32).reshape(B, 1, P), Pp, -1)
    w = conf_weights.astype(jnp.float32).reshape(C)

    kernel = functools.partial(_detect_loss_kernel, real_p=P, tile=T)
    out_shape = (
        jax.ShapeDtypeStruct((B, 1, 1), jnp.float32),   # loss_l partials
        jax.ShapeDtypeStruct((B, 1, 1), jnp.float32),   # loss_c partials
        jax.ShapeDtypeStruct((B, 1, 1), jnp.float32),   # num_pos partials
    )
    scalar_out = pl.BlockSpec((1, 1, 1), lambda b: (b, 0, 0))

    ll_p, lc_p, n_p = pl.pallas_call(
        kernel,
        out_shape=out_shape,
        grid=(B,),
        in_specs=[
            pl.BlockSpec((1, C, Pp), lambda b: (b, 0, 0)),   # class logits, lane-dense
            pl.BlockSpec((1, 4, Pp), lambda b: (b, 0, 0)),   # loc predictions
            pl.BlockSpec((1, 4, Pp), lambda b: (b, 0, 0)),   # loc targets
            pl.BlockSpec((1, 1, Pp), lambda b: (b, 0, 0)),   # matched labels
            pl.BlockSpec(memory_space=pltpu.MemorySpace.SMEM),  # per-class CE weights
        ],
        out_specs=(scalar_out, scalar_out, scalar_out),
        scratch_shapes=[
            pltpu.VMEM((1, Pp), jnp.float32),   # lc (mining scores), pl.ds-sliceable
            pltpu.VMEM((1, Pp), jnp.float32),   # count_ge accumulator
        ],
        compiler_params=pltpu.CompilerParams(
            dimension_semantics=("parallel",)),
    )(conf_T, loc_T, loct_T, conft3, w)

    loss_l = jnp.sum(ll_p)
    loss_c = jnp.sum(lc_p)
    n = jnp.sum(n_p).astype(jnp.int32)
    return loss_l, loss_c, n


def detect_loss_ref(loc_data, conf_data, loc_t, conf_t, conf_weights):
    """Pure-JAX reference mirroring the PyTorch forward (uses a real sort)."""
    B, P, C = conf_data.shape
    pos = conf_t > 0
    d = loc_data - loc_t
    ad = jnp.abs(d)
    sl1 = jnp.where(ad < 1.0, 0.5 * d * d, ad - 0.5)
    loss_l = jnp.sum(sl1 * pos[..., None])

    probs = jax.nn.softmax(conf_data, axis=-1)
    lc = jnp.where(pos, -2.0, -probs[..., 0])
    lc_sorted = -jnp.sort(-lc, axis=1)                       # descending
    num_pos = jnp.sum(pos, axis=1)
    num_neg = jnp.clip(NEGPOS_RATIO * num_pos, 3, P - 1)
    thr = lc_sorted[jnp.arange(B), num_neg]
    neg = lc > thr[:, None]
    mask = pos | neg

    logp = jax.nn.log_softmax(conf_data, axis=-1)
    nll = -jnp.take_along_axis(logp, conf_t[..., None], axis=-1)[..., 0]
    w_t = conf_weights[conf_t]
    loss_c = jnp.sum(jnp.where(mask, w_t * nll, 0.0))
    N = jnp.sum(num_pos)
    return loss_l, loss_c, N


def _make_inputs(key, B, P, C):
    k1, k2, k3, k4, k5 = jax.random.split(key, 5)
    loc_data = jax.random.normal(k1, (B, P, 4), jnp.float32)
    conf_data = 2.0 * jax.random.normal(k2, (B, P, C), jnp.float32)
    loc_t = jax.random.normal(k3, (B, P, 4), jnp.float32)
    # ~10% of priors matched to a foreground class (1..C-1), rest background (0)
    labels = jax.random.randint(k4, (B, P), 1, C)
    conf_t = jnp.where(jax.random.uniform(k5, (B, P)) < 0.1, labels, 0).astype(jnp.int32)
    conf_weights = 1.0 + 0.1 * jnp.arange(C, dtype=jnp.float32)
    return loc_data, conf_data, loc_t, conf_t, conf_weights


if __name__ == "__main__":
    key = jax.random.PRNGKey(0)
    k_a, k_b = jax.random.split(key)

    # case 1: small canonical shapes; case 2: non-multiple-of-128 P exercises the
    # padding path and the multi-tile ranking loops.
    for (k, B, P, C) in ((k_a, 2, 128, 8), (k_b, 2, 300, 6)):
        args = _make_inputs(k, B, P, C)
        ll, lc, n = detect_loss(*args)
        jax.block_until_ready((ll, lc, n))

        rll, rlc, rn = detect_loss_ref(*args)
        assert jnp.allclose(ll, rll, rtol=5e-4, atol=1e-3), (B, P, C, ll, rll)
        assert jnp.allclose(lc, rlc, rtol=5e-4, atol=5e-3), (B, P, C, lc, rlc)
        assert int(n) == int(rn), (B, P, C, n, rn)

    print("KERNEL_OK")
</pallas_src>

<mosaic_0001>
module attributes {stable_mosaic.version = 11 : i64} {
  func.func @_detect_loss_kernel(%arg0: i32, %arg1: memref<1x8x128xf32, #tpu.memory_space<vmem>>, %arg2: memref<1x4x128xf32, #tpu.memory_space<vmem>>, %arg3: memref<1x4x128xf32, #tpu.memory_space<vmem>>, %arg4: memref<1x1x128xi32, #tpu.memory_space<vmem>>, %arg5: memref<8xf32, #tpu.memory_space<smem>>, %arg6: memref<1x1x1xf32, #tpu.memory_space<vmem>>, %arg7: memref<1x1x1xf32, #tpu.memory_space<vmem>>, %arg8: memref<1x1x1xf32, #tpu.memory_space<vmem>>, %arg9: memref<1x128xf32, #tpu.memory_space<vmem>>, %arg10: memref<1x128xf32, #tpu.memory_space<vmem>>) attributes {dimension_semantics = [#tpu.dimension_semantics<parallel>], iteration_bounds = array<i64: 2>, scalar_prefetch = 0 : i64, scratch_operands = 2 : i64, tpu.core_type = #tpu.core_type<tc>, window_params = [{transform_indices = @transform_0, window_bounds = array<i64: 1, 8, 128>}, {transform_indices = @transform_1, window_bounds = array<i64: 1, 4, 128>}, {transform_indices = @transform_2, window_bounds = array<i64: 1, 4, 128>}, {transform_indices = @transform_3, window_bounds = array<i64: 1, 1, 128>}, {transform_indices = @transform_4, window_bounds = array<i64: 8>}, {transform_indices = @transform_5, window_bounds = array<i64: 1, 1, 1>}, {transform_indices = @transform_6, window_bounds = array<i64: 1, 1, 1>}, {transform_indices = @transform_7, window_bounds = array<i64: 1, 1, 1>}]} {
    %c0 = arith.constant 0 : index
    %c0_0 = arith.constant 0 : index
    %c0_1 = arith.constant 0 : index
    %0 = vector.load %arg1[%c0, %c0_0, %c0_1] : memref<1x8x128xf32, #tpu.memory_space<vmem>>, vector<1x8x128xf32>
    %1 = vector.shape_cast %0 : vector<1x8x128xf32> to vector<8x128xf32>
    %c0_2 = arith.constant 0 : index
    %c0_3 = arith.constant 0 : index
    %c0_4 = arith.constant 0 : index
    %2 = vector.load %arg4[%c0_2, %c0_3, %c0_4] : memref<1x1x128xi32, #tpu.memory_space<vmem>>, vector<1x1x128xi32>
    %3 = vector.shape_cast %2 : vector<1x1x128xi32> to vector<1x128xi32>
    %c0_i32 = arith.constant 0 : i32
    %4 = vector.broadcast %c0_i32 : i32 to vector<1x128xi32>
    %5 = arith.cmpi sgt, %3, %4 : vector<1x128xi32>
    %c0_i32_5 = arith.constant 0 : i32
    %6 = vector.broadcast %c0_i32_5 : i32 to vector<1x128xi32>
    %7 = arith.cmpi sge, %3, %6 : vector<1x128xi32>
    %8 = arith.extui %5 : vector<1x128xi1> to vector<1x128xi32>
    %9 = arith.sitofp %8 : vector<1x128xi32> to vector<1x128xf32>
    %c0_6 = arith.constant 0 : index
    %c0_7 = arith.constant 0 : index
    %c0_8 = arith.constant 0 : index
    %10 = vector.load %arg2[%c0_6, %c0_7, %c0_8] : memref<1x4x128xf32, #tpu.memory_space<vmem>>, vector<1x4x128xf32>
    %11 = vector.shape_cast %10 : vector<1x4x128xf32> to vector<4x128xf32>
    %c0_9 = arith.constant 0 : index
    %c0_10 = arith.constant 0 : index
    %c0_11 = arith.constant 0 : index
    %12 = vector.load %arg3[%c0_9, %c0_10, %c0_11] : memref<1x4x128xf32, #tpu.memory_space<vmem>>, vector<1x4x128xf32>
    %13 = vector.shape_cast %12 : vector<1x4x128xf32> to vector<4x128xf32>
    %14 = arith.subf %11, %13 : vector<4x128xf32>
    %15 = math.absf %14 : vector<4x128xf32>
    %cst = arith.constant 1.000000e+00 : f32
    %16 = vector.broadcast %cst : f32 to vector<4x128xf32>
    %17 = arith.cmpf olt, %15, %16 : vector<4x128xf32>
    %cst_12 = arith.constant 5.000000e-01 : f32
    %18 = vector.broadcast %cst_12 : f32 to vector<4x128xf32>
    %19 = arith.mulf %18, %14 : vector<4x128xf32>
    %20 = arith.mulf %19, %14 : vector<4x128xf32>
    %cst_13 = arith.constant 5.000000e-01 : f32
    %21 = vector.broadcast %cst_13 : f32 to vector<4x128xf32>
    %22 = arith.subf %15, %21 : vector<4x128xf32>
    %23 = arith.select %17, %20, %22 : vector<4x128xi1>, vector<4x128xf32>
    %cst_14 = arith.constant dense<0.000000e+00> : vector<128xf32>
    %24 = vector.multi_reduction <add>, %23, %cst_14 [0] : vector<4x128xf32> to vector<128xf32>
    %25 = vector.shape_cast %24 : vector<128xf32> to vector<1x128xf32>
    %26 = arith.mulf %25, %9 : vector<1x128xf32>
    %27 = vector.shape_cast %26 : vector<1x128xf32> to vector<1x1x128xf32>
    %cst_15 = arith.constant dense<0.000000e+00> : vector<1xf32>
    %28 = vector.multi_reduction <add>, %27, %cst_15 [1, 2] : vector<1x1x128xf32> to vector<1xf32>
    %29 = vector.shape_cast %28 : vector<1xf32> to vector<1x1x1xf32>
    %30 = vector.extract %29[0, 0, 0] : f32 from vector<1x1x1xf32>
    %cst_16 = arith.constant dense<0xFF800000> : vector<128xf32>
    %31 = vector.multi_reduction <maximumf>, %1, %cst_16 [0] : vector<8x128xf32> to vector<128xf32>
    %32 = vector.shape_cast %31 : vector<128xf32> to vector<1x128xf32>
    %33 = vector.broadcast %32 : vector<1x128xf32> to vector<8x128xf32>
    %34 = arith.subf %1, %33 : vector<8x128xf32>
    %35 = math.exp %34 : vector<8x128xf32>
    %cst_17 = arith.constant dense<0.000000e+00> : vector<128xf32>
    %36 = vector.multi_reduction <add>, %35, %cst_17 [0] : vector<8x128xf32> to vector<128xf32>
    %37 = vector.shape_cast %36 : vector<128xf32> to vector<1x128xf32>
    %38 = math.log %37 : vector<1x128xf32>
    %39 = arith.addf %38, %32 : vector<1x128xf32>
    %40 = vector.extract_strided_slice %1 {offsets = [0, 0], sizes = [1, 128], strides = [1, 1]} : vector<8x128xf32> to vector<1x128xf32>
    %41 = arith.subf %40, %39 : vector<1x128xf32>
    %42 = math.exp %41 : vector<1x128xf32>
    %cst_18 = arith.constant 0.000000e+00 : f32
    %43 = vector.broadcast %cst_18 : f32 to vector<1x128xf32>
    %cst_19 = arith.constant 0.000000e+00 : f32
    %44 = vector.broadcast %cst_19 : f32 to vector<1x128xf32>
    %c0_i32_20 = arith.constant 0 : i32
    %45 = vector.broadcast %c0_i32_20 : i32 to vector<1x128xi32>
    %46 = arith.cmpi eq, %3, %45 : vector<1x128xi32>
    %47 = vector.extract_strided_slice %1 {offsets = [0, 0], sizes = [1, 128], strides = [1, 1]} : vector<8x128xf32> to vector<1x128xf32>
    %48 = arith.select %46, %47, %43 : vector<1x128xi1>, vector<1x128xf32>
    %c0_21 = arith.constant 0 : index
    %49 = memref.load %arg5[%c0_21] : memref<8xf32, #tpu.memory_space<smem>>
    %50 = vector.broadcast %49 : f32 to vector<1x128xf32>
    %51 = arith.select %46, %50, %44 : vector<1x128xi1>, vector<1x128xf32>
    %c1_i32 = arith.constant 1 : i32
    %52 = vector.broadcast %c1_i32 : i32 to vector<1x128xi32>
    %53 = arith.cmpi eq, %3, %52 : vector<1x128xi32>
    %54 = vector.extract_strided_slice %1 {offsets = [1, 0], sizes = [1, 128], strides = [1, 1]} : vector<8x128xf32> to vector<1x128xf32>
    %55 = arith.select %53, %54, %48 : vector<1x128xi1>, vector<1x128xf32>
    %c1 = arith.constant 1 : index
    %56 = memref.load %arg5[%c1] : memref<8xf32, #tpu.memory_space<smem>>
    %57 = vector.broadcast %56 : f32 to vector<1x128xf32>
    %58 = arith.select %53, %57, %51 : vector<1x128xi1>, vector<1x128xf32>
    %c2_i32 = arith.constant 2 : i32
    %59 = vector.broadcast %c2_i32 : i32 to vector<1x128xi32>
    %60 = arith.cmpi eq, %3, %59 : vector<1x128xi32>
    %61 = vector.extract_strided_slice %1 {offsets = [2, 0], sizes = [1, 128], strides = [1, 1]} : vector<8x128xf32> to vector<1x128xf32>
    %62 = arith.select %60, %61, %55 : vector<1x128xi1>, vector<1x128xf32>
    %c2 = arith.constant 2 : index
    %63 = memref.load %arg5[%c2] : memref<8xf32, #tpu.memory_space<smem>>
    %64 = vector.broadcast %63 : f32 to vector<1x128xf32>
    %65 = arith.select %60, %64, %58 : vector<1x128xi1>, vector<1x128xf32>
    %c3_i32 = arith.constant 3 : i32
    %66 = vector.broadcast %c3_i32 : i32 to vector<1x128xi32>
    %67 = arith.cmpi eq, %3, %66 : vector<1x128xi32>
    %68 = vector.extract_strided_slice %1 {offsets = [3, 0], sizes = [1, 128], strides = [1, 1]} : vector<8x128xf32> to vector<1x128xf32>
    %69 = arith.select %67, %68, %62 : vector<1x128xi1>, vector<1x128xf32>
    %c3 = arith.constant 3 : index
    %70 = memref.load %arg5[%c3] : memref<8xf32, #tpu.memory_space<smem>>
    %71 = vector.broadcast %70 : f32 to vector<1x128xf32>
    %72 = arith.select %67, %71, %65 : vector<1x128xi1>, vector<1x128xf32>
    %c4_i32 = arith.constant 4 : i32
    %73 = vector.broadcast %c4_i32 : i32 to vector<1x128xi32>
    %74 = arith.cmpi eq, %3, %73 : vector<1x128xi32>
    %75 = vector.extract_strided_slice %1 {offsets = [4, 0], sizes = [1, 128], strides = [1, 1]} : vector<8x128xf32> to vector<1x128xf32>
    %76 = arith.select %74, %75, %69 : vector<1x128xi1>, vector<1x128xf32>
    %c4 = arith.constant 4 : index
    %77 = memref.load %arg5[%c4] : memref<8xf32, #tpu.memory_space<smem>>
    %78 = vector.broadcast %77 : f32 to vector<1x128xf32>
    %79 = arith.select %74, %78, %72 : vector<1x128xi1>, vector<1x128xf32>
    %c5_i32 = arith.constant 5 : i32
    %80 = vector.broadcast %c5_i32 : i32 to vector<1x128xi32>
    %81 = arith.cmpi eq, %3, %80 : vector<1x128xi32>
    %82 = vector.extract_strided_slice %1 {offsets = [5, 0], sizes = [1, 128], strides = [1, 1]} : vector<8x128xf32> to vector<1x128xf32>
    %83 = arith.select %81, %82, %76 : vector<1x128xi1>, vector<1x128xf32>
    %c5 = arith.constant 5 : index
    %84 = memref.load %arg5[%c5] : memref<8xf32, #tpu.memory_space<smem>>
    %85 = vector.broadcast %84 : f32 to vector<1x128xf32>
    %86 = arith.select %81, %85, %79 : vector<1x128xi1>, vector<1x128xf32>
    %c6_i32 = arith.constant 6 : i32
    %87 = vector.broadcast %c6_i32 : i32 to vector<1x128xi32>
    %88 = arith.cmpi eq, %3, %87 : vector<1x128xi32>
    %89 = vector.extract_strided_slice %1 {offsets = [6, 0], sizes = [1, 128], strides = [1, 1]} : vector<8x128xf32> to vector<1x128xf32>
    %90 = arith.select %88, %89, %83 : vector<1x128xi1>, vector<1x128xf32>
    %c6 = arith.constant 6 : index
    %91 = memref.load %arg5[%c6] : memref<8xf32, #tpu.memory_space<smem>>
    %92 = vector.broadcast %91 : f32 to vector<1x128xf32>
    %93 = arith.select %88, %92, %86 : vector<1x128xi1>, vector<1x128xf32>
    %c7_i32 = arith.constant 7 : i32
    %94 = vector.broadcast %c7_i32 : i32 to vector<1x128xi32>
    %95 = arith.cmpi eq, %3, %94 : vector<1x128xi32>
    %96 = vector.extract_strided_slice %1 {offsets = [7, 0], sizes = [1, 128], strides = [1, 1]} : vector<8x128xf32> to vector<1x128xf32>
    %97 = arith.select %95, %96, %90 : vector<1x128xi1>, vector<1x128xf32>
    %c7 = arith.constant 7 : index
    %98 = memref.load %arg5[%c7] : memref<8xf32, #tpu.memory_space<smem>>
    %99 = vector.broadcast %98 : f32 to vector<1x128xf32>
    %100 = arith.select %95, %99, %93 : vector<1x128xi1>, vector<1x128xf32>
    %101 = arith.subf %39, %97 : vector<1x128xf32>
    %102 = arith.mulf %100, %101 : vector<1x128xf32>
    %cst_22 = arith.constant 1.000000e+00 : f32
    %103 = vector.broadcast %cst_22 : f32 to vector<1x128xf32>
    %104 = arith.subf %103, %9 : vector<1x128xf32>
    %105 = arith.mulf %102, %104 : vector<1x128xf32>
    %cst_23 = arith.constant 0.000000e+00 : f32
    %106 = vector.broadcast %cst_23 : f32 to vector<1x128xf32>
    %107 = arith.subf %106, %42 : vector<1x128xf32>
    %cst_24 = arith.constant -3.000000e+00 : f32
    %108 = vector.broadcast %cst_24 : f32 to vector<1x128xf32>
    %109 = arith.select %7, %107, %108 : vector<1x128xi1>, vector<1x128xf32>
    %cst_25 = arith.constant -2.000000e+00 : f32
    %110 = vector.broadcast %cst_25 : f32 to vector<1x128xf32>
    %111 = arith.select %5, %110, %109 : vector<1x128xi1>, vector<1x128xf32>
    %c0_26 = arith.constant 0 : index
    %c0_27 = arith.constant 0 : index
    %112 = vector.load %arg9[%c0_26, %c0_27] : memref<1x128xf32, #tpu.memory_space<vmem>>, vector<1x128xf32>
    tpu.vector_store %arg9[%c0_26, %c0_27], %111 {strides = array<i32>} : memref<1x128xf32, #tpu.memory_space<vmem>>, vector<1x128xf32>,
    %113 = vector.shape_cast %9 : vector<1x128xf32> to vector<1x1x128xf32>
    %cst_28 = arith.constant dense<0.000000e+00> : vector<1xf32>
    %114 = vector.multi_reduction <add>, %113, %cst_28 [1, 2] : vector<1x1x128xf32> to vector<1xf32>
    %115 = vector.shape_cast %114 : vector<1xf32> to vector<1x1x1xf32>
    %116 = vector.extract %115[0, 0, 0] : f32 from vector<1x1x1xf32>
    %cst_29 = arith.constant 3.000000e+00 : f32
    %117 = arith.mulf %cst_29, %116 : f32
    %cst_30 = arith.constant 3.000000e+00 : f32
    %cst_31 = arith.constant 1.270000e+02 : f32
    %118 = arith.maximumf %cst_30, %117 : f32
    %119 = arith.minimumf %cst_31, %118 : f32
    %cst_32 = arith.constant 0.000000e+00 : f32
    %120 = vector.broadcast %cst_32 : f32 to vector<1x128xf32>
    %c0_33 = arith.constant 0 : index
    %c0_34 = arith.constant 0 : index
    %121 = vector.load %arg10[%c0_33, %c0_34] : memref<1x128xf32, #tpu.memory_space<vmem>>, vector<1x128xf32>
    tpu.vector_store %arg10[%c0_33, %c0_34], %120 {strides = array<i32>} : memref<1x128xf32, #tpu.memory_space<vmem>>, vector<1x128xf32>,
    %122 = tpu.iota {dimensions = array<i32: 0>} : vector<128x128xi32>
    %123 = tpu.iota {dimensions = array<i32: 1>} : vector<128x128xi32>
    %124 = arith.cmpi eq, %122, %123 : vector<128x128xi32>
    %cst_35 = arith.constant 1.000000e+00 : bf16
    %125 = vector.broadcast %cst_35 : bf16 to vector<1x128xbf16>
    %c0_i32_36 = arith.constant 0 : i32
    %c128_i32 = arith.constant 128 : i32
    %126 = arith.muli %c0_i32_36, %c128_i32 : i32
    %127 = tpu.assume_multiple %126, 128 : i32
    %c0_37 = arith.constant 0 : index
    %128 = arith.index_cast %127 : i32 to index
    %129 = vector.load %arg9[%c0_37, %128] : memref<1x128xf32, #tpu.memory_space<vmem>>, vector<1x128xf32>
    %cst_38 = arith.constant 0.000000e+00 : f32
    %130 = vector.shape_cast %129 : vector<1x128xf32> to vector<1x128xf32>
    %131 = vector.broadcast %130 : vector<1x128xf32> to vector<128x128xf32>
    %132 = vector.broadcast %cst_38 : f32 to vector<128x128xf32>
    %133 = arith.select %124, %131, %132 : vector<128x128xi1>, vector<128x128xf32>
    %cst_39 = arith.constant dense<0.000000e+00> : vector<128xf32>
    %134 = vector.multi_reduction <add>, %133, %cst_39 [1] : vector<128x128xf32> to vector<128xf32>
    %135 = vector.shape_cast %134 : vector<128xf32> to vector<128x1xf32>
    %c0_i32_40 = arith.constant 0 : i32
    %c128_i32_41 = arith.constant 128 : i32
    %136 = arith.muli %c0_i32_40, %c128_i32_41 : i32
    %137 = tpu.assume_multiple %136, 128 : i32
    %c0_42 = arith.constant 0 : index
    %138 = arith.index_cast %137 : i32 to index
    %139 = vector.load %arg9[%c0_42, %138] : memref<1x128xf32, #tpu.memory_space<vmem>>, vector<1x128xf32>
    %140 = vector.broadcast %135 : vector<128x1xf32> to vector<128x128xf32>
    %141 = vector.broadcast %139 : vector<1x128xf32> to vector<128x128xf32>
    %142 = arith.cmpf oge, %140, %141 : vector<128x128xf32>
    %143 = arith.extui %142 : vector<128x128xi1> to vector<128x128xi32>
    %144 = arith.sitofp %143 : vector<128x128xi32> to vector<128x128xf32>
    %145 = arith.truncf %144 : vector<128x128xf32> to vector<128x128xbf16>
    %cst_43 = arith.constant dense<0.000000e+00> : vector<1x128xf32>
    %146 = tpu.matmul %125, %145, %cst_43 {dimension_numbers = #tpu.dot_dimension_numbers<[1], [0], [0], [1], [0, 0, 1, 1], [], []>} : vector<1x128xbf16>, vector<128x128xbf16>, vector<1x128xf32> -> vector<1x128xf32>
    %c0_44 = arith.constant 0 : index
    %147 = arith.index_cast %137 : i32 to index
    %148 = vector.load %arg10[%c0_44, %147] : memref<1x128xf32, #tpu.memory_space<vmem>>, vector<1x128xf32>
    %149 = arith.addf %148, %146 : vector<1x128xf32>
    %c0_45 = arith.constant 0 : index
    %150 = arith.index_cast %137 : i32 to index
    %151 = vector.load %arg10[%c0_45, %150] : memref<1x128xf32, #tpu.memory_space<vmem>>, vector<1x128xf32>
    tpu.vector_store %arg10[%c0_45, %150], %149 {strides = array<i32>} : memref<1x128xf32, #tpu.memory_space<vmem>>, vector<1x128xf32>,
    %c1_i32_46 = arith.constant 1 : i32
    %c1_i32_47 = arith.constant 1 : i32
    %c0_48 = arith.constant 0 : index
    %c0_49 = arith.constant 0 : index
    %152 = vector.load %arg10[%c0_48, %c0_49] : memref<1x128xf32, #tpu.memory_space<vmem>>, vector<1x128xf32>
    %153 = vector.broadcast %119 : f32 to vector<1x128xf32>
    %154 = arith.cmpf ole, %152, %153 : vector<1x128xf32>
    %155 = arith.mulf %9, %102 : vector<1x128xf32>
    %156 = vector.shape_cast %155 : vector<1x128xf32> to vector<1x1x128xf32>
    %cst_50 = arith.constant dense<0.000000e+00> : vector<1xf32>
    %157 = vector.multi_reduction <add>, %156, %cst_50 [1, 2] : vector<1x1x128xf32> to vector<1xf32>
    %158 = vector.shape_cast %157 : vector<1xf32> to vector<1x1x1xf32>
    %159 = vector.extract %158[0, 0, 0] : f32 from vector<1x1x1xf32>
    %cst_51 = arith.constant 0.000000e+00 : f32
    %160 = vector.broadcast %cst_51 : f32 to vector<1x128xf32>
    %161 = arith.select %154, %105, %160 : vector<1x128xi1>, vector<1x128xf32>
    %162 = vector.shape_cast %161 : vector<1x128xf32> to vector<1x1x128xf32>
    %cst_52 = arith.constant dense<0.000000e+00> : vector<1xf32>
    %163 = vector.multi_reduction <add>, %162, %cst_52 [1, 2] : vector<1x1x128xf32> to vector<1xf32>
    %164 = vector.shape_cast %163 : vector<1xf32> to vector<1x1x1xf32>
    %165 = vector.extract %164[0, 0, 0] : f32 from vector<1x1x1xf32>
    %166 = arith.addf %159, %165 : f32
    %167 = vector.broadcast %30 : f32 to vector<1x1x1xf32>
    %c0_53 = arith.constant 0 : index
    %c0_54 = arith.constant 0 : index
    %c0_55 = arith.constant 0 : index
    %168 = vector.load %arg6[%c0_53, %c0_54, %c0_55] : memref<1x1x1xf32, #tpu.memory_space<vmem>>, vector<1x1x1xf32>
    tpu.vector_store %arg6[%c0_53, %c0_54, %c0_55], %167 {strides = array<i32>} : memref<1x1x1xf32, #tpu.memory_space<vmem>>, vector<1x1x1xf32>,
    %169 = vector.broadcast %166 : f32 to vector<1x1x1xf32>
    %c0_56 = arith.constant 0 : index
    %c0_57 = arith.constant 0 : index
    %c0_58 = arith.constant 0 : index
    %170 = vector.load %arg7[%c0_56, %c0_57, %c0_58] : memref<1x1x1xf32, #tpu.memory_space<vmem>>, vector<1x1x1xf32>
    tpu.vector_store %arg7[%c0_56, %c0_57, %c0_58], %169 {strides = array<i32>} : memref<1x1x1xf32, #tpu.memory_space<vmem>>, vector<1x1x1xf32>,
    %171 = vector.broadcast %116 : f32 to vector<1x1x1xf32>
    %c0_59 = arith.constant 0 : index
    %c0_60 = arith.constant 0 : index
    %c0_61 = arith.constant 0 : index
    %172 = vector.load %arg8[%c0_59, %c0_60, %c0_61] : memref<1x1x1xf32, #tpu.memory_space<vmem>>, vector<1x1x1xf32>
    tpu.vector_store %arg8[%c0_59, %c0_60, %c0_61], %171 {strides = array<i32>} : memref<1x1x1xf32, #tpu.memory_space<vmem>>, vector<1x1x1xf32>,
    return
  }
  func.func @transform_0(%arg0: i32) -> (i32, i32, i32) {
    %c0_i32 = arith.constant 0 : i32
    %c0_i32_0 = arith.constant 0 : i32
    %c0_i32_1 = arith.constant 0 : i32
    return %arg0, %c0_i32, %c0_i32_0 : i32, i32, i32
  }
  func.func @transform_1(%arg0: i32) -> (i32, i32, i32) {
    %c0_i32 = arith.constant 0 : i32
    %c0_i32_0 = arith.constant 0 : i32
    %c0_i32_1 = arith.constant 0 : i32
    return %arg0, %c0_i32, %c0_i32_0 : i32, i32, i32
  }
  func.func @transform_2(%arg0: i32) -> (i32, i32, i32) {
    %c0_i32 = arith.constant 0 : i32
    %c0_i32_0 = arith.constant 0 : i32
    %c0_i32_1 = arith.constant 0 : i32
    return %arg0, %c0_i32, %c0_i32_0 : i32, i32, i32
  }
  func.func @transform_3(%arg0: i32) -> (i32, i32, i32) {
    %c0_i32 = arith.constant 0 : i32
    %c0_i32_0 = arith.constant 0 : i32
    %c0_i32_1 = arith.constant 0 : i32
    return %arg0, %c0_i32, %c0_i32_0 : i32, i32, i32
  }
  func.func @transform_4(%arg0: i32) -> i32 {
    %c0_i32 = arith.constant 0 : i32
    %c0_i32_0 = arith.constant 0 : i32
    return %c0_i32 : i32
  }
  func.func @transform_5(%arg0: i32) -> (i32, i32, i32) {
    %c0_i32 = arith.constant 0 : i32
    %c0_i32_0 = arith.constant 0 : i32
    %c0_i32_1 = arith.constant 0 : i32
    return %arg0, %c0_i32, %c0_i32_0 : i32, i32, i32
  }
  func.func @transform_6(%arg0: i32) -> (i32, i32, i32) {
    %c0_i32 = arith.constant 0 : i32
    %c0_i32_0 = arith.constant 0 : i32
    %c0_i32_1 = arith.constant 0 : i32
    return %arg0, %c0_i32, %c0_i32_0 : i32, i32, i32
  }
  func.func @transform_7(%arg0: i32) -> (i32, i32, i32) {
    %c0_i32 = arith.constant 0 : i32
    %c0_i32_0 = arith.constant 0 : i32
    %c0_i32_1 = arith.constant 0 : i32
    return %arg0, %c0_i32, %c0_i32_0 : i32, i32, i32
  }
}

</mosaic_0001>

<bundles_post_ra>
// kernel: detect_loss.1
= control target key start
LH: loop header
LB: loop body
LE: loop exit
PB: predicated region body
PF: predicated region fallthrough
CT: control target
= control target key end

     0   :  { %13 = vsyncpa [#allocation5], 0  ;;  %s1643_s0 = inlined_call_operand.vmem [shape: f32[2,8,128], index: 0, kind: input, shape index: {}]   ;;  %s1644_s1 = inlined_call_operand.hbm [shape: f32[2,4,128], index: 1, kind: input, shape index: {}]   ;;  %s1645_s2 = inlined_call_operand.hbm [shape: f32[2,4,128], index: 2, kind: input, shape index: {}]   ;;  %s1646_s3 = inlined_call_operand.vmem [shape: s32[2,1,128], index: 3, kind: input, shape index: {}]   ;;  %s1647_s4 = inlined_call_operand.vmem [shape: f32[8], index: 4, kind: input, shape index: {}]   ;;  %s1648_s5 = inlined_call_operand.vmem [shape: f32[2,1,1], index: 5, kind: output, shape index: {0}]   ;;  %s1649_s6 = inlined_call_operand.vmem [shape: f32[2,1,1], index: 6, kind: output, shape index: {1}]   ;;  %s1650_s7 = inlined_call_operand.vmem [shape: f32[2,1,1], index: 7, kind: output, shape index: {2}]  }
   0x1   :  { %15 = vsyncpa [#allocation5 + $0x1], 0 }
   0x2   :  { %16 = vsyncpa [#allocation8], 0 }
   0x3   :  { %18 = vsyncpa [#allocation8 + $0x1], 0 }
   0x4   :  { %19 = vsyncpa [#allocation6], 0  ;;  %s1286_s24 = smov 0   ;;  %s1288_s25 = smov 0  }
   0x5   :  { %s1290_s26 = smov 0   ;;  %s1292_s27 = smov 0  }
   0x6 LB: > { %s1305_s28 = sadd.s32 4294967295, %s1234_s27   ;;  %p71_p0 = scmp.ne.s32.totalorder %s1226_s25, %s1222_s24  ;;  %s1234_s27 = sphi %s1292_s27, %s1666_s27   ;;  %s1230_s26 = sphi %s1290_s26, %s1665_s26   ;;  %s1226_s25 = sphi %s1288_s25, %s1664_s25   ;;  %s1222_s24 = sphi %s1286_s24, %s1663_s24  }
   0x7   : > { %p1651_p1 = scmp.eq.s32.totalorder %s1305_s28, 0  ;;  %p956_p2 = scmp.ge.s32.totalorder %s1234_s27, 1 }
   0x8   : > { %p233_p3 = scmp.lt.s32.totalorder %s1234_s27, 3  ;;  %s246_s9 = sshll.u32 %s1647_s4, 4  ;;  %s247_s9 = int_to_ptr.vmem [resolvable:$true] %s246_s9 }
   0x9   : > { %p1313_p4 = por %p1651_p1, %p71_p0  ;;  %s1327_s11 = sadd.s32 1, %s1234_s27  }
   0xa   : > { %p1320_p5 = pnand %p956_p2, %p233_p3  ;;  %s55_s13 = ssub.s32 %s1234_s27, %s1327_s11 }
   0xb   : > { %s1654_s29 = scalar_select %p1313_p4, 1, 0 }
   0xc   : > { %s1655_s10 = scalar_select %p1320_p5, 1, 0 }
   0xd   : > { %p1057_p6 = pneg %p1320_p5  ;;  %p1337_p8 = scmp.eq.s32.totalorder %s55_s13, 0 }
   0xe   : > { %s58_s15 = sadd.s32 1, %s1230_s26  ;;  %p65_p9 = scmp.ne.s32.totalorder %s1230_s26, %s1226_s25 }
   0xf   : > { %p1331_p7 = pnand %p1057_p6, %p1651_p1  ;;  %s1117_s16 = scalar_lea.vmem %s247_s9, 16 }
  0x10   : > { %p1118_p10 = scmp.ne.s32.totalorder %s247_s9, %s1117_s16  ;;  %p1125_p0 = scmp.lt.s32.totalorder %s247_s9, %s247_s9 }
  0x11   : > { %p1119_p11 = pneg %p1331_p7  ;;  %p1126_p2 = scmp.lt.s32.totalorder %s1117_s16, %s1117_s16 }
  0x13   : > { %p1120_p12 = pnand %p1119_p11, %p1118_p10  ;;  %p1127_p3 = por %p1126_p2, %p1125_p0 }
  0x15   : > { %p1121_p13 = pneg %p1120_p12 }
  0x17   : > { %p1128_p6 = pnand %p1127_p3, %p1121_p13 }
  0x19   : > { %1131 = shalt.err (!%p1128_p6)
}
  0x1a   : > { %s1236_s17 = smov [#allocation9]   ;;  %p66_p10 = scmp.eq.s32.totalorder %s1234_s27, 0 }
  0x1b   : > { %1060 = dma.vmem_to_smem (!%p1331_p7), %s247_s9, 16, %s1236_s17, [#allocation6]  }
  0x1c   : > { %s1351_s18 = scalar_select %p1337_p8, %s1230_s26, %s58_s15  }
  0x1d   : > { %p1069_p11 = scmp.lt.s32.totalorder %s1234_s27, 2  ;;  %s1356_s19 = sand.u32 1, %s1230_s26  }
  0x1e   : > { %s960_s20 = sshll.u32 %s1234_s27, 6  ;;  %p67_p12 = por %p66_p10, %p65_p9 }
  0x1f   : > { %s959_s21 = sshll.u32 %s1356_s19, 2  ;;  %s1368_s24 = scalar_lea.hbm %s1644_s1, %s960_s20 }
  0x20   : > { %p1370_p7 = pnand %p1069_p11, %p67_p12  ;;  %s268_s8 = scalar_lea.vmem [#allocation4], %s959_s21 }
  0x21   : > { %s275_s9 = sshll.u32 %s268_s8, 4  ;;  %s265_s12 = scalar_lea.sflag [#allocation5], %s1356_s19  ;;  %s1376_s9 = int_to_ptr.vmem [resolvable:$true] %s275_s9 }
  0x22   : > { %s1132_s13 = scalar_lea.hbm %s1368_s24, 64  ;;  %p1134_p9 = pneg %p1370_p7 }
  0x23   : > { %p1133_p8 = scmp.ne.s32.totalorder %s1368_s24, %s1132_s13  ;;  %s1137_s16 = scalar_lea.hbm %s1644_s1, 128 }
  0x24   : > { %p1138_p2 = scmp.lt.u32.totalorder %s1368_s24, %s1644_s1  ;;  %p1139_p3 = scmp.lt.u32.totalorder %s1137_s16, %s1132_s13 }
  0x25   : > { %p1135_p13 = pnand %p1134_p9, %p1133_p8  ;;  %p1141_p10 = scmp.lt.u32.totalorder %s1132_s13, %s1368_s24 }
  0x26   : > { %p1140_p6 = por %p1139_p3, %p1138_p2 }
  0x27   : > { %p1136_p0 = pneg %p1135_p13 }
  0x28   : > { %p1142_p11 = por %p1141_p10, %p1140_p6 }
  0x2a   : > { %p1143_p12 = pnand %p1142_p11, %p1136_p0 }
  0x2c   : > { %1146 = shalt.err (!%p1143_p12)
}
  0x2d   : > { %s1147_s23 = scalar_lea.vmem %s1376_s9, 64  ;;  %s1237_s8 = smov [#allocation4]  }
  0x2e   : > { %p1148_p8 = scmp.ne.s32.totalorder %s1376_s9, %s1147_s23  ;;  %s1152_s14 = sshll.u32 %s1237_s8, 4  ;;  %s1153_s14 = int_to_ptr.vmem [resolvable:$false] %s1152_s14 }
  0x2f   : > { %s1154_s15 = scalar_lea.vmem %s1153_s14, 128  ;;  %p1155_p4 = scmp.lt.s32.totalorder %s1376_s9, %s1153_s14 }
  0x30   : > { %p1150_p13 = pnand %p1148_p8, %p1134_p9  ;;  %p1156_p2 = scmp.lt.s32.totalorder %s1154_s15, %s1147_s23 }
  0x32   : > { %p1151_p1 = pneg %p1150_p13  ;;  %p1157_p3 = por %p1156_p2, %p1155_p4 }
  0x34   : > { %p1158_p6 = pnand %p1157_p3, %p1151_p1 }
  0x36   : > { %1161 = shalt.err (!%p1158_p6)
}
  0x37   : > { %1064 = dma.hbm_to_vmem [thread:$0]  (!%p1370_p7), %s1368_s24, 64, %s1376_s9, %s265_s12  }
  0x38   : > { %s1409_s17 = scalar_lea.hbm %s1645_s2, %s960_s20  ;;  %s286_s22 = scalar_lea.vmem [#allocation7], %s959_s21 }
  0x39   : > { %s293_s23 = sshll.u32 %s286_s22, 4  ;;  %s283_s8 = scalar_lea.sflag [#allocation8], %s1356_s19  ;;  %s294_s23 = int_to_ptr.vmem [resolvable:$true] %s293_s23 }
  0x3a   : > { %s1162_s14 = scalar_lea.hbm %s1409_s17, 64  ;;  %s1167_s20 = scalar_lea.hbm %s1645_s2, 128 }
  0x3b   : > { %p1163_p1 = scmp.ne.s32.totalorder %s1409_s17, %s1162_s14  ;;  %p1168_p10 = scmp.lt.u32.totalorder %s1409_s17, %s1645_s2 }
  0x3c   : > { %p1169_p11 = scmp.lt.u32.totalorder %s1167_s20, %s1162_s14  ;;  %p1171_p8 = scmp.lt.u32.totalorder %s1162_s14, %s1409_s17 }
  0x3d   : > { %p1165_p4 = pnand %p1163_p1, %p1134_p9 }
  0x3e   : > { %p1170_p12 = por %p1169_p11, %p1168_p10 }
  0x3f   : > { %p1166_p0 = pneg %p1165_p4 }
  0x40   : > { %p1172_p13 = por %p1171_p8, %p1170_p12 }
  0x42   : > { %p1173_p2 = pnand %p1172_p13, %p1166_p0 }
  0x44   : > { %1176 = shalt.err (!%p1173_p2)
}
  0x45   : > { %s1177_s19 = scalar_lea.vmem %s294_s23, 64  ;;  %s1238_s21 = smov [#allocation7]  }
  0x46   : > { %p1178_p3 = scmp.ne.s32.totalorder %s294_s23, %s1177_s19  ;;  %s1182_s15 = sshll.u32 %s1238_s21, 4  ;;  %s1183_s15 = int_to_ptr.vmem [resolvable:$false] %s1182_s15 }
  0x47   : > { %s1184_s13 = scalar_lea.vmem %s1183_s15, 128  ;;  %p1185_p4 = scmp.lt.s32.totalorder %s294_s23, %s1183_s15 }
  0x48   : > { %p1180_p6 = pnand %p1178_p3, %p1134_p9  ;;  %p1186_p5 = scmp.lt.s32.totalorder %s1184_s13, %s1177_s19 }
  0x4a   : > { %p1181_p1 = pneg %p1180_p6  ;;  %p1187_p10 = por %p1186_p5, %p1185_p4 }
  0x4c   : > { %p1188_p11 = pnand %p1187_p10, %p1181_p1 }
  0x4e   : > { %1191 = shalt.err (!%p1188_p11)
}
  0x4f   : > { %1067 = dma.hbm_to_vmem [thread:$0]  (!%p1370_p7), %s1409_s17, 64, %s294_s23, %s283_s8  }
  0x50   : > { %p1659_p0 = scmp.ne.s32.totalorder %s1655_s10, 0 }
  0x51   : > { %s310_s16 = sand.u32 (!%p1659_p0), 1, %s1226_s25   ;;  %p1660_p9 = scmp.ne.s32.totalorder (!%p1659_p0), %s1654_s29, 0 }
  0x52   : > { %308 = sbr.rel (%p1659_p0) target bundleno = 798 (0x31e), region = 40  ;;  %s964_s22 = sshll.u32 (!%p1659_p0), %s310_s16, 2 }
  0x53   : > { %s311_s14 = scalar_lea.sflag (!%p1659_p0), [#allocation5], %s310_s16  ;;  %s1436_s27 = scalar_lea.vmem (!%p1659_p0), [#allocation4], %s964_s22 }
  0x59   : > { %1209 = dma.done.wait (%p1660_p9), %s311_s14, 64  }
  0x5a   : > { %1211 = vsyncadd (%p1660_p9), %s311_s14, 4294967232  ;;  %s320_s24 = scalar_lea.sflag [#allocation8], %s310_s16  ;;  %s1442_s30 = scalar_lea.vmem [#allocation7], %s964_s22 }
  0x5b   : > { %1213 = dma.done.wait (%p1660_p9), %s320_s24, 64  }
  0x5c   : > { %1215 = vsyncadd (%p1660_p9), %s320_s24, 4294967232  ;;  %p1661_p5 = scmp.eq.s32.totalorder %s1305_s28, 0 }
  0x5e   : > { %1217 = dma.done.wait (%p1661_p5), [#allocation6], 16   ;;  %p1662_p7 = pmov %p1661_p5 }
  0x60   : > { %1219 = vsyncadd (%p1662_p7), [#allocation6], 4294967280 }
  0x61   : > { %332 = sfence }
  0x62   : > { %p375_p12 = scmp.lt.s32.totalorder %s1305_s28, 1  ;;  %v459_v22 = vlaneseq  ;;  %v1239_v57 = vmov 0.0   ;;  %v399_v62 = vld [vmem:[%s1436_s27] sm:$0xf]  ;;  %v400_v63 = vld [vmem:[%s1442_s30] sm:$0xf] }
  0x63   : > { %567 = vst [vmem:[#allocation3] sm:$0x1] %v1239_v57  ;;  %1021 = vmatprep.subr.bf16.mxu0 %v1239_v57  ;;  %s451_s12 = sld [smem:[#allocation9]]  ;;  %s970_s19 = sld [smem:[#allocation9 + $0x1]] }
  0x64   : > { %s1668_s28 = smov (!%p375_p12, %s1305_s28), 1  ;;  %v1477_v25 = vshrl.u32 %v459_v22, 7  ;;  %v1482_v29 = vand.u32 127, %v459_v22  ;;  %s971_s21 = sld [smem:[#allocation9 + $0x2]] }
  0x65   : > { %s967_s10 = sshll.u32 %s1668_s28, 3  ;;  %s381_s9 = scalar_lea.vmem %s1646_s3, %s1668_s28 }
  0x66   : > { %s378_s8 = scalar_lea.vmem %s1643_s0, %s967_s10  ;;  %v1473_v21 = vld [vmem:[%s381_s9] sm:$0x1]  ;;  %v571_v28 = vadd.s32 16, %v1477_v25  ;;  %v572_v30 = vadd.s32 24, %v1477_v25  ;;  %v570_v31 = vadd.s32 8, %v1477_v25  ;;  %vm587_vm3 = vcmp.eq.s32.totalorder %v1477_v25, %v1482_v29  ;;  %s1574_s15 = sld [smem:[#allocation9 + $0x3]] }
  0x67   : > { %v1460_v0 = vld [vmem:[%s378_s8] sm:$0xff]  ;;  %vm396_vm0 = vcmp.ge.s32.totalorder %v1473_v21, 0  ;;  %vm395_vm1 = vcmp.gt.s32.totalorder %v1473_v21, 0  ;;  %v574_v33 = vadd.s32 40, %v1477_v25  ;;  %v573_v34 = vadd.s32 32, %v1477_v25  ;;  %s1577_s13 = sld [smem:[#allocation9 + $0x4]]  ;;  %s384_s30 = scalar_lea.vmem %s1648_s5, %s1668_s28 }
  0x68   : > { %v428_v1 = vrot.slane %v1460_v0, 4  ;;  %vm589_vm2 = vcmp.eq.s32.totalorder %v571_v28, %v1482_v29  ;;  %vm590_vm4 = vcmp.eq.s32.totalorder %v572_v30, %v1482_v29  ;;  %vm588_vm5 = vcmp.eq.s32.totalorder %v570_v31, %v1482_v29  ;;  %s1581_s16 = sld [smem:[#allocation9 + $0x5]]  ;;  %s1584_s22 = sld [smem:[#allocation9 + $0x6]] }
  0x69   : > { %vm592_vm6 = vcmp.eq.s32.totalorder %v574_v33, %v1482_v29  ;;  %vm591_vm7 = vcmp.eq.s32.totalorder %v573_v34, %v1482_v29  ;;  %v576_v39 = vadd.s32 56, %v1477_v25  ;;  %v575_v40 = vadd.s32 48, %v1477_v25  ;;  %s1587_s14 = sld [smem:[#allocation9 + $0x7]]  ;;  %s390_s8 = scalar_lea.vmem %s1650_s7, %s1668_s28 }
  0x6a   : > { %v429_v2 = vmax.f32 %v1460_v0, %v428_v1  ;;  %v578_v43 = vadd.s32 72, %v1477_v25  ;;  %v577_v44 = vadd.s32 64, %v1477_v25  ;;  %v580_v47 = vadd.s32 88, %v1477_v25  ;;  %s1244_s9 = smov 3.0  }
  0x6b   : > { %vm594_vm8 = vcmp.eq.s32.totalorder %v576_v39, %v1482_v29  ;;  %vm593_vm9 = vcmp.eq.s32.totalorder %v575_v40, %v1482_v29  ;;  %v579_v48 = vadd.s32 80, %v1477_v25  ;;  %v582_v51 = vadd.s32 104, %v1477_v25 }
  0x6c   : > { %v430_v3 = vrot.slane %v429_v2, 2  ;;  %vm596_vm10 = vcmp.eq.s32.totalorder %v578_v43, %v1482_v29  ;;  %vm595_vm11 = vcmp.eq.s32.totalorder %v577_v44, %v1482_v29  ;;  %vm598_vm12 = vcmp.eq.s32.totalorder %v580_v47, %v1482_v29 }
  0x6d   : > { %vm597_vm13 = vcmp.eq.s32.totalorder %v579_v48, %v1482_v29  ;;  %v581_v52 = vadd.s32 96, %v1477_v25  ;;  %vm600_vm14 = vcmp.eq.s32.totalorder %v582_v51, %v1482_v29  ;;  %v584_v55 = vadd.s32 120, %v1477_v25 }
  0x6e   : > { %v431_v4 = vmax.f32 %v429_v2, %v430_v3  ;;  %v583_v56 = vadd.s32 112, %v1477_v25  ;;  %v401_v1 = vsub.f32 %v399_v62, %v400_v63  ;;  %v1242_v39 = vmov 1065369472  }
  0x6f   : > { %vm599_vm15 = vcmp.eq.s32.totalorder %v581_v52, %v1482_v29 }
  0x70   : > { %v432_v5 = vrot.slane %v431_v4, 1  ;;  %v402_v2 = vand.u32 2147483647, %v401_v1  ;;  %v404_v3 = vmul.f32 0.5, %v401_v1 }
  0x72   : > { %v433_v6 = vmax.f32 %v431_v4, %v432_v5  ;;  %v405_v4 = vmul.f32 %v404_v3, %v401_v1  ;;  %v969_v5 = vadd.f32 -0.5, %v402_v2  ;;  %v452_v1 = vstv %s451_s12 }
  0x74   : > { %v434_v7 = vsub.f32 %v1460_v0, %v433_v6 }
  0x76   : > { %v435_v8 = vmul.f32 1.442695, %v434_v7 }
  0x78   : > { %1111 = vpow2.f32 %v435_v8 }
  0x82   : > { %v1112_v9 = vpop.eup %1111 }
  0x83   : > { %v437_v10 = vrot.slane %v1112_v9, 4 }
  0x85   : > { %v438_v11 = vadd.f32 %v1112_v9, %v437_v10 }
  0x87   : > { %v439_v12 = vrot.slane %v438_v11, 2 }
  0x89   : > { %v440_v13 = vadd.f32 %v439_v12, %v438_v11  ;;  %v1541_v12 = vsel %vm395_vm1, 1.0, %v1239_v57 }
  0x8b   : > { %v441_v14 = vrot.slane %v440_v13, 1 }
  0x8d   : > { %v442_v15 = vadd.f32 %v441_v14, %v440_v13 }
  0x8f   : > { %1113 = vlog2.f32 %v442_v15 }
  0x99   : > { %v1114_v16 = vpop.eup %1113 }
  0x9a   : > { %v444_v17 = vmul.f32 0.6931472, %v1114_v16 }
  0x9c   : > { %v1465_v18 = vadd.f32 %v444_v17, %v433_v6 }
  0x9e   : > { %v446_v19 = vsub.f32 %v1460_v0, %v1465_v18 }
  0xa0   : > { %v447_v20 = vmul.f32 1.442695, %v446_v19 }
  0xa2   : > { %1115 = vpow2.f32 %v447_v20 }
  0xac   : > { %v1116_v23 = vpop.eup %1115 }
  0xad   : > { %v550_v24 = vsub.f32 0.0, %v1116_v23 }
  0xaf   : > { %v551_v26 = vsel %vm396_vm0, %v550_v24, -3.0  ;;  %vm602_vm0 = vcmp.eq.s32.totalorder %v584_v55, %v1482_v29  ;;  %v1241_v24 = vmov 1.0|1.0  }
  0xb0   : > { %v552_v27 = vsel %vm395_vm1, -2.0, %v551_v26 }
  0xb1   : > { %553 = vst [vmem:[#allocation2] sm:$0x1] %v552_v27 }
  0xb8   : > { %v1489_v32 = vld [vmem:[#allocation2] ss:$0 sm:$0xff] }
  0xb9   : > { %v612_v35 = vsel %vm589_vm2, %v1489_v32, 0.0  ;;  %v610_v36 = vsel %vm587_vm3, %v1489_v32, 0.0  ;;  %v613_v37 = vsel %vm590_vm4, %v1489_v32, 0.0  ;;  %v611_v38 = vsel %vm588_vm5, %v1489_v32, 0.0 }
  0xba   : > { %630 = vadd.xlane.f32.xlu1 %v612_v35  ;;  %626 = vadd.xlane.f32.xlu0 %v610_v36  ;;  %v615_v41 = vsel %vm592_vm6, %v1489_v32, 0.0  ;;  %v614_v42 = vsel %vm591_vm7, %v1489_v32, 0.0  ;;  %v617_v45 = vsel %vm594_vm8, %v1489_v32, 0.0  ;;  %v616_v46 = vsel %vm593_vm9, %v1489_v32, 0.0 }
  0xbb   : > { %v619_v49 = vsel %vm596_vm10, %v1489_v32, 0.0  ;;  %v618_v50 = vsel %vm595_vm11, %v1489_v32, 0.0  ;;  %v621_v53 = vsel %vm598_vm12, %v1489_v32, 0.0  ;;  %v620_v54 = vsel %vm597_vm13, %v1489_v32, 0.0 }
  0xbc   : > { %v623_v58 = vsel %vm600_vm14, %v1489_v32, 0.0  ;;  %v622_v59 = vsel %vm599_vm15, %v1489_v32, 0.0  ;;  %vm601_vm2 = vcmp.eq.s32.totalorder %v583_v56, %v1482_v29  ;;  %v625_v60 = vsel %vm602_vm0, %v1489_v32, 0.0 }
  0xbd   : > { %v624_v61 = vsel %vm601_vm2, %v1489_v32, 0.0  ;;  %vm403_vm3 = vcmp.lt.f32.partialorder %v402_v2, 1.0  ;;  %vm408_vm4 = vcmask 1043456   ;;  %vm1240_vm5 = vmmov 0  }
  0xbe   : > { %632 = vadd.xlane.f32.xlu1 %v613_v37  ;;  %628 = vadd.xlane.f32.xlu0 %v611_v38  ;;  %v407_v6 = vsel %vm403_vm3, %v405_v4, %v969_v5  ;;  %vm417_vm6 = vcmask 1040384   ;;  %v481_v5 = vstv %s970_s19  ;;  %s1245_s19 = smov 127.0  }
  0xbf   : > { %v409_v7 = vsel %vm408_vm4, %v407_v6, 0.0  ;;  %1037 = vmatprep.mubr.msk.bf16.mxu0 %vm1240_vm5, %v1239_v57  ;;  %v554_v14 = vsel %vm417_vm6, %v1541_v12, 0.0 }
  0xc0   : > { %v410_v8 = vrot.slane %v409_v7, 4 }
  0xc2   : > { %636 = vadd.xlane.f32.xlu1 %v615_v41  ;;  %634 = vadd.xlane.f32.xlu0 %v614_v42  ;;  %v411_v9 = vadd.f32 %v410_v8, %v409_v7  ;;  %v488_v7 = vstv %s971_s21 }
  0xc4   : > { %v412_v10 = vrot.slane %v411_v9, 2 }
  0xc6   : > { %640 = vadd.xlane.f32.xlu1 %v617_v45  ;;  %638 = vadd.xlane.f32.xlu0 %v616_v46  ;;  %v413_v11 = vadd.f32 %v412_v10, %v411_v9  ;;  %v495_v10 = vstv %s1574_s15 }
  0xc8   : > { %v414_v13 = vrot.slane %v413_v11, 1 }
  0xca   : > { %644 = vadd.xlane.f32.xlu1 %v619_v49  ;;  %642 = vadd.xlane.f32.xlu0 %v618_v50  ;;  %v415_v15 = vadd.f32 %v414_v13, %v413_v11 }
  0xcc   : > { %v416_v16 = vmul.f32 %v1541_v12, %v415_v15 }
  0xce   : > { %648 = vadd.xlane.f32.xlu1 %v621_v53  ;;  %646 = vadd.xlane.f32.xlu0 %v620_v54  ;;  %v418_v17 = vsel %vm417_vm6, %v416_v16, 0.0  ;;  %v1243_v53 = vmov 1966171168  }
  0xcf   : > { %v457_v54 = vunpack.c.l.s4 %v1243_v53 }
  0xd1   : > { %v458_v55 = vunpack.c.0.s8 %v457_v54 }
  0xd2   : > { %652 = vadd.xlane.f32.xlu1 %v623_v58  ;;  %650 = vadd.xlane.f32.xlu0 %v622_v59  ;;  %v498_v59 = vcombine.high %v1460_v0, %v1460_v0 }
  0xd3   : > { %v461_v56 = vsub.s32 %v458_v55, %v1477_v25 }
  0xd5   : > { %v505_v63 = vrot.slane %v498_v59, %v461_v56 }
  0xd6   : > { %656 = vadd.xlane.f32.xlu1 %v625_v60  ;;  %654 = vadd.xlane.f32.xlu0 %v624_v61 }
  0xd7   : > { %v512_v11 = vrot.slane %v505_v63, %v461_v56  ;;  %v519_v15 = vcombine.high %v505_v63, %v505_v63 }
  0xda   : > { %555 = vadd.xlane.f32.xlu1 %v554_v14  ;;  %419 = vadd.xlane.f32.xlu0 %v418_v17  ;;  %v516_v14 = vstv %s1577_s13 }
 0x147   : > { %v631_v19 = vpop.xlane.xlu1 %630  ;;  %v627_v20 = vpop.xlane.xlu0 %626 }
 0x148   : > { %vm658_vm1 = vcmp.ge.f32.partialorder %v627_v20, %v1489_v32  ;;  %vm660_vm9 = vcmp.ge.f32.partialorder %v631_v19, %v1489_v32  ;;  %v530_v19 = vstv %s1581_s16  ;;  %v533_v20 = vcombine.high %v512_v11, %v512_v11 }
 0x14b   : > { %v633_v22 = vpop.xlane.xlu1 %632  ;;  %v629_v23 = vpop.xlane.xlu0 %628 }
 0x14c   : > { %vm659_vm7 = vcmp.ge.f32.partialorder %v629_v23, %v1489_v32  ;;  %vm661_vm10 = vcmp.ge.f32.partialorder %v633_v22, %v1489_v32  ;;  %v526_v23 = vrot.slane %v519_v15, %v461_v56 }
 0x14d   : > { %vm994_vm8 = vmpackc.low %vm659_vm7, %vm658_vm1 }
 0x14e   : > { %1022 = vmatpush3.bf16.msk.msra.mxu0 %vm994_vm8, %v1241_v24  ;;  %vm996_vm13 = vmpackc.low %vm661_vm10, %vm660_vm9 }
 0x14f   : > { %v637_v26 = vpop.xlane.xlu1 %636  ;;  %v635_v27 = vpop.xlane.xlu0 %634  ;;  %1023 = vmatprep.subr.bf16.mxu0 %v1239_v57 }
 0x150   : > { %vm663_vm11 = vcmp.ge.f32.partialorder %v637_v26, %v1489_v32  ;;  %vm662_vm12 = vcmp.ge.f32.partialorder %v635_v27, %v1489_v32  ;;  %v537_v26 = vstv %s1584_s22 }
 0x151   : > { %vm998_vm14 = vmpackc.low %vm663_vm11, %vm662_vm12 }
 0x152   : > { %1024 = vmatpush3.bf16.msk.msra.mxu0 %vm996_vm13, %v1241_v24 }
 0x153   : > { %v641_v28 = vpop.xlane.xlu1 %640  ;;  %v639_v29 = vpop.xlane.xlu0 %638  ;;  %1025 = vmatprep.subr.bf16.mxu0 %v1239_v57 }
 0x154   : > { %vm665_vm15 = vcmp.ge.f32.partialorder %v641_v28, %v1489_v32  ;;  %vm664_vm0 = vcmp.ge.f32.partialorder %v639_v29, %v1489_v32  ;;  %v544_v29 = vstv %s1587_s14  ;;  %s387_s14 = scalar_lea.vmem %s1649_s6, %s1668_s28 }
 0x155   : > { %vm1000_vm2 = vmpackc.low %vm665_vm15, %vm664_vm0  ;;  %vm784_vm15 = vcmask 0   ;;  %vm449_vm0 = vcmp.eq.s32.totalorder %v1473_v21, 0 }
 0x156   : > { %1026 = vmatpush3.bf16.msk.msra.mxu0 %vm998_vm14, %v1241_v24  ;;  %v450_v25 = vsel %vm449_vm0, %v1460_v0, 0.0  ;;  %v453_v4 = vsel %vm449_vm0, %v452_v1, 0.0 }
 0x157   : > { %v645_v30 = vpop.xlane.xlu1 %644  ;;  %v643_v31 = vpop.xlane.xlu0 %642  ;;  %1027 = vmatprep.subr.bf16.mxu0 %v1239_v57 }
 0x158   : > { %vm667_vm3 = vcmp.ge.f32.partialorder %v645_v30, %v1489_v32  ;;  %vm666_vm4 = vcmp.ge.f32.partialorder %v643_v31, %v1489_v32  ;;  %v540_v31 = vcombine.high %v526_v23, %v526_v23 }
 0x159   : > { %vm1002_vm5 = vmpackc.low %vm667_vm3, %vm666_vm4  ;;  %vm483_vm3 = vcmp.eq.s32.totalorder %v1473_v21, 2  ;;  %vm490_vm4 = vcmp.eq.s32.totalorder %v1473_v21, 3 }
 0x15a   : > { %1028 = vmatpush3.bf16.msk.msra.mxu0 %vm1000_vm2, %v1241_v24  ;;  %vm454_vm2 = vcmp.eq.s32.totalorder %v1473_v21, 1 }
 0x15b   : > { %v649_v33 = vpop.xlane.xlu1 %648  ;;  %v647_v34 = vpop.xlane.xlu0 %646  ;;  %1029 = vmatprep.subr.bf16.mxu0 %v1239_v57 }
 0x15c   : > { %vm669_vm7 = vcmp.ge.f32.partialorder %v649_v33, %v1489_v32  ;;  %vm668_vm1 = vcmp.ge.f32.partialorder %v647_v34, %v1489_v32 }
 0x15d   : > { %vm1004_vm8 = vmpackc.low %vm669_vm7, %vm668_vm1  ;;  %vm518_vm7 = vcmp.eq.s32.totalorder %v1473_v21, 5  ;;  %vm532_vm1 = vcmp.eq.s32.totalorder %v1473_v21, 6 }
 0x15e   : > { %1030 = vmatpush3.bf16.msk.msra.mxu0 %vm1002_vm5, %v1241_v24  ;;  %vm497_vm5 = vcmp.eq.s32.totalorder %v1473_v21, 4 }
 0x15f   : > { %v653_v35 = vpop.xlane.xlu1 %652  ;;  %v651_v36 = vpop.xlane.xlu0 %650  ;;  %1031 = vmatprep.subr.bf16.mxu0 %v1239_v57 }
 0x160   : > { %vm671_vm9 = vcmp.ge.f32.partialorder %v653_v35, %v1489_v32  ;;  %vm670_vm10 = vcmp.ge.f32.partialorder %v651_v36, %v1489_v32 }
 0x161   : > { %vm1006_vm11 = vmpackc.low %vm671_vm9, %vm670_vm10 }
 0x162   : > { %1032 = vmatpush3.bf16.msk.msra.mxu0 %vm1004_vm8, %v1241_v24  ;;  %vm539_vm8 = vcmp.eq.s32.totalorder %v1473_v21, 7  ;;  %v548_v21 = vsub.f32 1.0, %v1541_v12 }
 0x163   : > { %v657_v37 = vpop.xlane.xlu1 %656  ;;  %v655_v38 = vpop.xlane.xlu0 %654  ;;  %1033 = vmatprep.subr.bf16.mxu0 %v1239_v57 }
 0x164   : > { %vm673_vm12 = vcmp.ge.f32.partialorder %v657_v37, %v1489_v32  ;;  %vm672_vm13 = vcmp.ge.f32.partialorder %v655_v38, %v1489_v32 }
 0x165   : > { %vm1008_vm14 = vmpackc.low %vm673_vm12, %vm672_vm13 }
 0x166   : > { %1034 = vmatpush3.bf16.msk.msra.mxu0 %vm1006_vm11, %v1241_v24 }
 0x167   : > { %1035 = vmatprep.subr.bf16.mxu0 %v1239_v57  ;;  %v556_v40 = vpop.xlane.xlu1 %555  ;;  %v420_v44 = vpop.xlane.xlu0 %419  ;;  %v462_v57 = vrot.slane %v1460_v0, %v461_v56  ;;  %v482_v0 = vsel %vm454_vm2, %v481_v5, %v453_v4 }
 0x168   : > { %v557_v41 = vrot.slane %v556_v40, 4  ;;  %v421_v45 = vrot.slane %v420_v44, 4  ;;  %v489_v9 = vsel %vm483_vm3, %v488_v7, %v482_v0 }
 0x169   : > { %v463_v58 = vcombine.high %v462_v57, %v462_v57  ;;  %v470_v60 = vrot.slane %v462_v57, %v461_v56  ;;  %v496_v13 = vsel %vm490_vm4, %v495_v10, %v489_v9 }
 0x16a   : > { %1036 = vmatpush3.bf16.msk.msra.mxu0 %vm1008_vm14, %v1241_v24  ;;  %v558_v42 = vadd.f32 %v557_v41, %v556_v40  ;;  %v422_v47 = vadd.f32 %v421_v45, %v420_v44  ;;  %v517_v17 = vsel %vm497_vm5, %v516_v14, %v496_v13  ;;  %v754_v40 = vld [vmem:[#allocation3] sm:$0x1] }
 0x16b   : > { %v477_v61 = vrot.slane %v463_v58, %v461_v56  ;;  %v484_v62 = vcombine.high %v470_v60, %v470_v60  ;;  %v531_v24 = vsel %vm518_vm7, %v530_v19, %v517_v17 }
 0x16c   : > { %v559_v43 = vrot.slane %v558_v42, 2  ;;  %v423_v48 = vrot.slane %v422_v47, 2  ;;  %v538_v28 = vsel %vm532_vm1, %v537_v26, %v531_v24 }
 0x16d   : > { %1038 = vmatmul.mubr.bf16.vlgmr.msra.gmra.mrb[0].mxu0 %v1242_v39  ;;  %v479_v2 = vsel %vm454_vm2, %v477_v61, %v450_v25  ;;  %v491_v3 = vcombine.high %v477_v61, %v477_v61  ;;  %v545_v35 = vsel %vm539_vm8, %v544_v29, %v538_v28 }
 0x16e   : > { %v560_v46 = vadd.f32 %v559_v43, %v558_v42  ;;  %v424_v50 = vadd.f32 %v423_v48, %v422_v47  ;;  %v486_v6 = vsel %vm483_vm3, %v484_v62, %v479_v2 }
 0x16f   : > { %v493_v8 = vsel %vm490_vm4, %v491_v3, %v486_v6 }
 0x170   : > { %v561_v49 = vrot.slane %v560_v46, 1  ;;  %v425_v51 = vrot.slane %v424_v50, 1  ;;  %v514_v16 = vsel %vm497_vm5, %v512_v11, %v493_v8 }
 0x171   : > { %v528_v30 = vsel %vm518_vm7, %v526_v23, %v514_v16 }
 0x172   : > { %v562_v32 = vadd.f32 %v561_v49, %v560_v46  ;;  %v426_v52 = vadd.f32 %v425_v51, %v424_v50  ;;  %v535_v33 = vsel %vm532_vm1, %v533_v20, %v528_v30 }
 0x173   : > { %v542_v34 = vsel %vm539_vm8, %v540_v31, %v535_v33 }
 0x174   : > { %1041 = vpush %v426_v52  ;;  %v546_v36 = vsub.f32 %v1465_v18, %v542_v34 }
 0x175   : > { %1043 = vpush %v562_v32 }
 0x176   : > { %v547_v37 = vmul.f32 %v546_v36, %v545_v35 }
 0x178   : > { %v760_v38 = vmul.f32 %v1541_v12, %v547_v37  ;;  %v549_v18 = vmul.f32 %v548_v21, %v547_v37 }
 0x17a   : > { %v761_v39 = vsel %vm417_vm6, %v760_v38, 0.0 }
 0x17b   : > { %762 = vadd.xlane.f32.xlu0 %v761_v39 }
 0x1a5   : > { %s1042_s10 = spop %1041 }
 0x1a6   : > { %v783_v22 = vstv %s1042_s10  ;;  %s1603_s29 = spop %1043 }
 0x1a7   : > { %785 = vst.msk [vmem:[%s384_s30] sm:$0x1] %vm784_vm15, %v783_v22  ;;  %v788_v27 = vstv %s1603_s29  ;;  %s564_s20 = smul.f32 3.0, %s1603_s29 }
 0x1a8   : > { %789 = vst.msk [vmem:[%s390_s8] sm:$0x1] %vm784_vm15, %v788_v27 }
 0x1a9   : > { %s565_s12 = smax.f32 %s1244_s9, %s564_s20 }
 0x1aa   : > { %s566_s21 = smin.f32 %s1245_s19, %s565_s12 }
 0x1ab   : > { %v758_v47 = vstv %s566_s21 }
 0x208   : > { %v763_v50 = vpop.xlane.xlu0 %762 }
 0x209   : > { %v764_v51 = vrot.slane %v763_v50, 4 }
 0x20b   : > { %v765_v32 = vadd.f32 %v764_v51, %v763_v50 }
 0x20d   : > { %v766_v52 = vrot.slane %v765_v32, 2 }
 0x20f   : > { %v767_v53 = vadd.f32 %v766_v52, %v765_v32 }
 0x211   : > { %v768_v54 = vrot.slane %v767_v53, 1 }
 0x213   : > { %v769_v55 = vadd.f32 %v768_v54, %v767_v53 }
 0x215   : > { %1045 = vpush %v769_v55 }
 0x240   : > { %v748_v41 = vpop.f32.mrb[0].mxu0 }
 0x241   : > { %v755_v42 = vadd.f32 %v754_v40, %v748_v41  ;;  %v1039_v43 = vpop.f32.mrb[1].mxu0 }
 0x242   : > { %v751_v44 = vpop.f32.mrb[2].mxu0 }
 0x243   : > { %756 = vst [vmem:[#allocation3] sm:$0x1] %v755_v42  ;;  %v1040_v45 = vpop.f32.mrb[3].mxu0 }
 0x246   : > { %s1046_s15 = spop %1045 }
 0x24a   : > { %v757_v46 = vld [vmem:[#allocation3] sm:$0x1] }
 0x24b   : > { %vm759_vm9 = vcmp.le.f32.partialorder %v757_v46, %v758_v47 }
 0x24c   : > { %v771_v48 = vsel %vm759_vm9, %v549_v18, 0.0 }
 0x24d   : > { %v772_v49 = vsel %vm417_vm6, %v771_v48, 0.0 }
 0x24e   : > { %773 = vadd.xlane.f32.xlu1 %v772_v49 }
 0x2db   : > { %v774_v12 = vpop.xlane.xlu1 %773 }
 0x2dc   : > { %v775_v56 = vrot.slane %v774_v12, 4 }
 0x2de   : > { %v776_v57 = vadd.f32 %v775_v56, %v774_v12 }
 0x2e0   : > { %v777_v58 = vrot.slane %v776_v57, 2 }
 0x2e2   : > { %v778_v59 = vadd.f32 %v777_v58, %v776_v57 }
 0x2e4   : > { %v779_v60 = vrot.slane %v778_v59, 1 }
 0x2e6   : > { %v780_v61 = vadd.f32 %v779_v60, %v778_v59 }
 0x2e8   : > { %1047 = vpush %v780_v61 }
 0x319   : > { %s1048_s13 = spop %1047 }
 0x31a   : > { %s782_s27 = sadd.f32 %s1048_s13, %s1046_s15 }
 0x31c   : > { %v786_v25 = vstv %s782_s27 }
 0x31d   : > { %787 = vst.msk [vmem:[%s387_s14] sm:$0x1] %vm784_vm15, %v786_v25 }
 0x31e PF: > { %p22_p8 = scmp.ge.s32.totalorder %s1327_s11, 4   ;;  %s1663_s24 = smov %s1226_s25 }
 0x31f   : > { %s1664_s25 = smov %s1230_s26  ;;  %s1665_s26 = smov %s1351_s18 }
 0x320   : > { %s1666_s27 = smov %s1327_s11  ;;  %24 = sbr.rel (!%p22_p8) target bundleno = 6 (0x6), region = 128 }
 0x327   :  { %831 = vsyncpa [#allocation5], 1 }
 0x328   :  { %833 = vsyncpa [#allocation5 + $0x1], 1 }
 0x329   :  { %834 = vsyncpa [#allocation8], 1 }
 0x32a   :  { %836 = vsyncpa [#allocation8 + $0x1], 1 }
 0x32b   :  { %837 = vsyncpa [#allocation6], 1 }
 0x32c   :  { %839 = vsyncpa [#allocation6 + $0x1], 1 }

</bundles_post_ra>
